<compile_context>
chip_gen: v7x
topology: tpu7x:2x2x1
jax: 0.10.0
libtpu: 0.0.40
codegen_flags: <defaults>
</compile_context>

<pallas_src>
import jax
import jax.numpy as jnp
from jax.experimental import pallas as pl
from jax.experimental.pallas import tpu as pltpu

MAX_TORQUE = 2.0
DT = 0.05

LANE = 128
MAX_ROWS_PER_STEP = 1024   # R: (4+3)*R*128*4B, double-buffered ~= 7 MiB


def _pendulum_dx_kernel(coef_ref, xu_ref, o_ref):
    # coef_ref: SMEM f32[2] = (c1, c2) with DT pre-folded:
    #   c1 = DT * 3*g/(2*l)   (coefficient on sin_th)
    #   c2 = DT * 3/(m*l*l)   (coefficient on clamped u)
    # xu_ref: VMEM f32[4, R, 128]  planes = (cos_th, sin_th, dth, u)
    # o_ref:  VMEM f32[3, R, 128]  planes = (cos_newth, sin_newth, newdth)
    c1 = coef_ref[0]
    c2 = coef_ref[1]

    cos_th = xu_ref[0]                                   # (R, 128) dense tiles
    sin_th = xu_ref[1]
    dth = xu_ref[2]
    u = jnp.clip(xu_ref[3], -MAX_TORQUE, MAX_TORQUE)

    # newdth = dth + dt * (-3g/(2l) * (-sin_th) + 3u/(m l^2))
    newdth = dth + c1 * sin_th + c2 * u

    # th = atan2(sin_th, cos_th); newth = th + newdth*dt, expanded with the
    # angle-addition identity so only rsqrt / sin / cos (EUP ops) are needed:
    #   cos(newth) = (cos_th*cos(a) - sin_th*sin(a)) * inv_r
    #   sin(newth) = (sin_th*cos(a) + cos_th*sin(a)) * inv_r
    #   inv_r = rsqrt(cos_th^2 + sin_th^2)  (floored -> no NaN on padded rows)
    a = newdth * DT
    inv_r = jax.lax.rsqrt(jnp.maximum(cos_th * cos_th + sin_th * sin_th, 1e-12))
    cos_a = jnp.cos(a)
    sin_a = jnp.sin(a)

    o_ref[0] = (cos_th * cos_a - sin_th * sin_a) * inv_r
    o_ref[1] = (sin_th * cos_a + cos_th * sin_a) * inv_r
    o_ref[2] = newdth


@jax.jit
def pendulum_dx(x, u, params):
    """Pallas implementation of PendulumDx.forward (simple=True).

    x: (B, 3) = [cos_th, sin_th, dth], u: (B, 1), params: (3,) = (g, m, l).
    Returns (B, 3) next state.  1-D inputs are supported like the module.
    """
    squeeze = x.ndim == 1
    if squeeze:
        x = x[None, :]
        u = u[None, :]
    assert x.ndim == 2 and u.ndim == 2
    assert x.shape[1] == 3 and u.shape[1] == 1
    assert x.shape[0] == u.shape[0]

    x = jnp.asarray(x, jnp.float32)
    u = jnp.asarray(u, jnp.float32)
    params = jnp.asarray(params, jnp.float32)

    B = x.shape[0]

    # Fold all scalar parameter math (including dt) into two SMEM coefficients.
    g, m, l = params[0], params[1], params[2]
    coefs = jnp.stack([DT * 3.0 * g / (2.0 * l),
                       DT * 3.0 / (m * l * l)]).astype(jnp.float32)

    # Batch on sublanes+lanes: (B,4) -> (4, rows, 128).  The concat rides on
    # the pad/transpose copy the wrapper pays anyway to keep the (B,3) API.
    # TODO(synk): in a rollout loop, keep state in this (4, rows, 128) SoA
    # layout across timesteps and drop the boundary transposes entirely.
    rows0 = pl.cdiv(B, LANE)
    if rows0 <= MAX_ROWS_PER_STEP:
        R = rows0                       # single block == full extent (ok)
        rows = rows0
    else:
        R = MAX_ROWS_PER_STEP           # multiple of 8 -> valid block dim
        rows = pl.cdiv(rows0, R) * R
    Bp = rows * LANE

    xu = jnp.concatenate([x, u], axis=1)                 # (B, 4)
    xu = jnp.pad(xu, ((0, Bp - B), (0, 0)))              # (Bp, 4)
    xu = xu.T.reshape(4, rows, LANE)                     # (4, rows, 128)

    out = pl.pallas_call(
        _pendulum_dx_kernel,
        out_shape=jax.ShapeDtypeStruct((3, rows, LANE), jnp.float32),
        grid=(rows // R,),
        in_specs=[
            pl.BlockSpec(memory_space=pltpu.MemorySpace.SMEM),   # coefs (2,)
            pl.BlockSpec((4, R, LANE), lambda i: (0, i, 0)),     # xu slab
        ],
        out_specs=pl.BlockSpec((3, R, LANE), lambda i: (0, i, 0)),
        compiler_params=pltpu.CompilerParams(
            dimension_semantics=("parallel",)),
    )(coefs, xu)

    out = out.reshape(3, Bp)[:, :B].T                    # back to (B, 3)
    if squeeze:
        out = out[0]
    return out


def pendulum_dx_ref(x, u, params):
    """Pure-JAX reference mirroring the PyTorch forward exactly."""
    g, m, l = params[0], params[1], params[2]
    uc = jnp.clip(u, -MAX_TORQUE, MAX_TORQUE)[:, 0]
    cos_th, sin_th, dth = x[:, 0], x[:, 1], x[:, 2]
    th = jnp.arctan2(sin_th, cos_th)
    newdth = dth + DT * (-3.0 * g / (2.0 * l) * -sin_th + 3.0 * uc / (m * l ** 2))
    newth = th + newdth * DT
    return jnp.stack((jnp.cos(newth), jnp.sin(newth), newdth), axis=1)


if __name__ == "__main__":
    key = jax.random.PRNGKey(0)
    k1, k2, k3 = jax.random.split(key, 3)

    # Deterministic module parameters: simple=True -> (g, m, l) = (10, 1, 1)
    params = jnp.array([10.0, 1.0, 1.0], dtype=jnp.float32)

    B = 16
    # States built from random angles so cos^2 + sin^2 == 1 (valid state).
    th = jax.random.uniform(k1, (B,), jnp.float32, -jnp.pi, jnp.pi)
    dth = jax.random.uniform(k2, (B,), jnp.float32, -4.0, 4.0)
    x = jnp.stack((jnp.cos(th), jnp.sin(th), dth), axis=1)        # (B, 3)
    u = jax.random.uniform(k3, (B, 1), jnp.float32, -3.0, 3.0)    # exercises clamp

    out = jax.block_until_ready(pendulum_dx(x, u, params))
    ref = pendulum_dx_ref(x, u, params)
    assert out.shape == (B, 3) and out.dtype == jnp.float32
    assert bool(jnp.all(jnp.isfinite(out)))
    assert jnp.allclose(out, ref, atol=1e-4, rtol=1e-4), (
        f"max abs err = {jnp.max(jnp.abs(out - ref))}")

    # 1-D (squeeze) path of the module.
    out1 = jax.block_until_ready(pendulum_dx(x[0], u[0], params))
    assert out1.shape == (3,)
    assert jnp.allclose(out1, ref[0], atol=1e-4, rtol=1e-4)

    # Non-multiple-of-128 batch to exercise padding + tail slicing.
    B2 = 300
    kk1, kk2, kk3 = jax.random.split(jax.random.PRNGKey(1), 3)
    th2 = jax.random.uniform(kk1, (B2,), jnp.float32, -jnp.pi, jnp.pi)
    dth2 = jax.random.uniform(kk2, (B2,), jnp.float32, -4.0, 4.0)
    x2 = jnp.stack((jnp.cos(th2), jnp.sin(th2), dth2), axis=1)
    u2 = jax.random.uniform(kk3, (B2, 1), jnp.float32, -3.0, 3.0)
    out2 = jax.block_until_ready(pendulum_dx(x2, u2, params))
    ref2 = pendulum_dx_ref(x2, u2, params)
    assert out2.shape == (B2, 3)
    assert jnp.allclose(out2, ref2, atol=1e-4, rtol=1e-4), (
        f"max abs err = {jnp.max(jnp.abs(out2 - ref2))}")

    print("KERNEL_OK")
</pallas_src>

<mosaic_0001>
module attributes {stable_mosaic.version = 11 : i64} {
  func.func @_pendulum_dx_kernel(%arg0: i32, %arg1: memref<2xf32, #tpu.memory_space<smem>>, %arg2: memref<4x1x128xf32, #tpu.memory_space<vmem>>, %arg3: memref<3x1x128xf32, #tpu.memory_space<vmem>>) attributes {dimension_semantics = [#tpu.dimension_semantics<parallel>], iteration_bounds = array<i64: 1>, scalar_prefetch = 0 : i64, scratch_operands = 0 : i64, tpu.core_type = #tpu.core_type<tc>, window_params = [{transform_indices = @transform_0, window_bounds = array<i64: 2>}, {transform_indices = @transform_1, window_bounds = array<i64: 4, 1, 128>}, {transform_indices = @transform_2, window_bounds = array<i64: 3, 1, 128>}]} {
    %c0 = arith.constant 0 : index
    %0 = memref.load %arg1[%c0] : memref<2xf32, #tpu.memory_space<smem>>
    %c1 = arith.constant 1 : index
    %1 = memref.load %arg1[%c1] : memref<2xf32, #tpu.memory_space<smem>>
    %c0_0 = arith.constant 0 : index
    %c0_1 = arith.constant 0 : index
    %c0_2 = arith.constant 0 : index
    %2 = vector.load %arg2[%c0_0, %c0_1, %c0_2] : memref<4x1x128xf32, #tpu.memory_space<vmem>>, vector<1x1x128xf32>
    %3 = vector.shape_cast %2 : vector<1x1x128xf32> to vector<1x128xf32>
    %c1_3 = arith.constant 1 : index
    %c0_4 = arith.constant 0 : index
    %c0_5 = arith.constant 0 : index
    %4 = vector.load %arg2[%c1_3, %c0_4, %c0_5] : memref<4x1x128xf32, #tpu.memory_space<vmem>>, vector<1x1x128xf32>
    %5 = vector.shape_cast %4 : vector<1x1x128xf32> to vector<1x128xf32>
    %c2 = arith.constant 2 : index
    %c0_6 = arith.constant 0 : index
    %c0_7 = arith.constant 0 : index
    %6 = vector.load %arg2[%c2, %c0_6, %c0_7] : memref<4x1x128xf32, #tpu.memory_space<vmem>>, vector<1x1x128xf32>
    %7 = vector.shape_cast %6 : vector<1x1x128xf32> to vector<1x128xf32>
    %c3 = arith.constant 3 : index
    %c0_8 = arith.constant 0 : index
    %c0_9 = arith.constant 0 : index
    %8 = vector.load %arg2[%c3, %c0_8, %c0_9] : memref<4x1x128xf32, #tpu.memory_space<vmem>>, vector<1x1x128xf32>
    %9 = vector.shape_cast %8 : vector<1x1x128xf32> to vector<1x128xf32>
    %cst = arith.constant -2.000000e+00 : f32
    %cst_10 = arith.constant 2.000000e+00 : f32
    %10 = vector.broadcast %cst : f32 to vector<1x128xf32>
    %11 = arith.maximumf %10, %9 : vector<1x128xf32>
    %12 = vector.broadcast %cst_10 : f32 to vector<1x128xf32>
    %13 = arith.minimumf %12, %11 : vector<1x128xf32>
    %14 = vector.broadcast %0 : f32 to vector<1x128xf32>
    %15 = arith.mulf %14, %5 : vector<1x128xf32>
    %16 = arith.addf %7, %15 : vector<1x128xf32>
    %17 = vector.broadcast %1 : f32 to vector<1x128xf32>
    %18 = arith.mulf %17, %13 : vector<1x128xf32>
    %19 = arith.addf %16, %18 : vector<1x128xf32>
    %cst_11 = arith.constant 5.000000e-02 : f32
    %20 = vector.broadcast %cst_11 : f32 to vector<1x128xf32>
    %21 = arith.mulf %19, %20 : vector<1x128xf32>
    %22 = arith.mulf %3, %3 : vector<1x128xf32>
    %23 = arith.mulf %5, %5 : vector<1x128xf32>
    %24 = arith.addf %22, %23 : vector<1x128xf32>
    %cst_12 = arith.constant 9.99999996E-13 : f32
    %25 = vector.broadcast %cst_12 : f32 to vector<1x128xf32>
    %26 = arith.maximumf %24, %25 : vector<1x128xf32>
    %27 = math.rsqrt %26 : vector<1x128xf32>
    %28 = math.cos %21 : vector<1x128xf32>
    %29 = math.sin %21 : vector<1x128xf32>
    %30 = arith.mulf %3, %28 : vector<1x128xf32>
    %31 = arith.mulf %5, %29 : vector<1x128xf32>
    %32 = arith.subf %30, %31 : vector<1x128xf32>
    %33 = arith.mulf %32, %27 : vector<1x128xf32>
    %c0_13 = arith.constant 0 : index
    %c0_14 = arith.constant 0 : index
    %c0_15 = arith.constant 0 : index
    %34 = vector.load %arg3[%c0_13, %c0_14, %c0_15] : memref<3x1x128xf32, #tpu.memory_space<vmem>>, vector<1x1x128xf32>
    %35 = vector.shape_cast %34 : vector<1x1x128xf32> to vector<1x128xf32>
    %36 = vector.shape_cast %33 : vector<1x128xf32> to vector<1x1x128xf32>
    tpu.vector_store %arg3[%c0_13, %c0_14, %c0_15], %36 {strides = array<i32>} : memref<3x1x128xf32, #tpu.memory_space<vmem>>, vector<1x1x128xf32>,
    %37 = arith.mulf %5, %28 : vector<1x128xf32>
    %38 = arith.mulf %3, %29 : vector<1x128xf32>
    %39 = arith.addf %37, %38 : vector<1x128xf32>
    %40 = arith.mulf %39, %27 : vector<1x128xf32>
    %c1_16 = arith.constant 1 : index
    %c0_17 = arith.constant 0 : index
    %c0_18 = arith.constant 0 : index
    %41 = vector.load %arg3[%c1_16, %c0_17, %c0_18] : memref<3x1x128xf32, #tpu.memory_space<vmem>>, vector<1x1x128xf32>
    %42 = vector.shape_cast %41 : vector<1x1x128xf32> to vector<1x128xf32>
    %43 = vector.shape_cast %40 : vector<1x128xf32> to vector<1x1x128xf32>
    tpu.vector_store %arg3[%c1_16, %c0_17, %c0_18], %43 {strides = array<i32>} : memref<3x1x128xf32, #tpu.memory_space<vmem>>, vector<1x1x128xf32>,
    %c2_19 = arith.constant 2 : index
    %c0_20 = arith.constant 0 : index
    %c0_21 = arith.constant 0 : index
    %44 = vector.load %arg3[%c2_19, %c0_20, %c0_21] : memref<3x1x128xf32, #tpu.memory_space<vmem>>, vector<1x1x128xf32>
    %45 = vector.shape_cast %44 : vector<1x1x128xf32> to vector<1x128xf32>
    %46 = vector.shape_cast %19 : vector<1x128xf32> to vector<1x1x128xf32>
    tpu.vector_store %arg3[%c2_19, %c0_20, %c0_21], %46 {strides = array<i32>} : memref<3x1x128xf32, #tpu.memory_space<vmem>>, vector<1x1x128xf32>,
    return
  }
  func.func @transform_0(%arg0: i32) -> i32 {
    %c0_i32 = arith.constant 0 : i32
    %c0_i32_0 = arith.constant 0 : i32
    return %c0_i32 : i32
  }
  func.func @transform_1(%arg0: i32) -> (i32, i32, i32) {
    %c0_i32 = arith.constant 0 : i32
    %c0_i32_0 = arith.constant 0 : i32
    %c0_i32_1 = arith.constant 0 : i32
    return %c0_i32, %arg0, %c0_i32_0 : i32, i32, i32
  }
  func.func @transform_2(%arg0: i32) -> (i32, i32, i32) {
    %c0_i32 = arith.constant 0 : i32
    %c0_i32_0 = arith.constant 0 : i32
    %c0_i32_1 = arith.constant 0 : i32
    return %c0_i32, %arg0, %c0_i32_0 : i32, i32, i32
  }
}

</mosaic_0001>

<bundles_post_ra>
// kernel: pendulum_dx.1
= control target key start
LH: loop header
LB: loop body
LE: loop exit
PB: predicated region body
PF: predicated region fallthrough
CT: control target
= control target key end

     0   :  { %7 = vsyncpa [#allocation3], 0  ;;  %s392_s0 = inlined_call_operand.vmem [shape: f32[2], index: 0, kind: input, shape index: {}]   ;;  %s393_s1 = inlined_call_operand.vmem [shape: f32[4,1,128], index: 1, kind: input, shape index: {}]   ;;  %s394_s2 = inlined_call_operand.vmem [shape: f32[3,1,128], index: 2, kind: output, shape index: {}]  }
   0x1   :  { %s14_s11 = sshll.u32 %s392_s0, 4  ;;  %s15_s11 = int_to_ptr.vmem [resolvable:$true] %s14_s11 }
   0x2   :  { %s304_s12 = scalar_lea.vmem %s15_s11, 16  ;;  %p309_p1 = scmp.lt.s32.totalorder %s15_s11, %s15_s11 }
   0x3   :  { %p305_p0 = scmp.ne.s32.totalorder %s15_s11, %s304_s12  ;;  %p310_p2 = scmp.lt.s32.totalorder %s304_s12, %s304_s12 }
   0x5   :  { %p311_p3 = por %p310_p2, %p309_p1 }
   0x7   :  { %p312_p4 = pnand %p311_p3, %p305_p0 }
   0x9   :  { %315 = shalt.err (!%p312_p4)
}
   0xa   :  { %s318_s13 = smov [#allocation2]  }
   0xb   :  { %17 = dma.vmem_to_smem %s15_s11, 16, %s318_s13, [#allocation3]  }
   0xc   :  { %316 = dma.done.wait [#allocation3], 16  }
   0xd   :  { %317 = vsyncadd [#allocation3], 4294967280 }
   0xe   :  { %23 = sfence }
   0xf   :  { %s24_s14 = sld [smem:[#allocation2]]  ;;  %s272_s15 = sld [smem:[#allocation2 + $0x1]]  ;;  %v275_v0 = vld [vmem:[%s393_s1 + $0x3] sm:$0x1]  ;;  %v349_v2 = vld [vmem:[%s393_s1 + $0x1] sm:$0x1] }
  0x10   :  { %v276_v1 = vclamps-f32 %v275_v0, 2.0  ;;  %v274_v3 = vld [vmem:[%s393_s1 + $0x2] sm:$0x1]  ;;  %v319_v22 = vmov 683565275  }
  0x11   :  { %v320_v24 = vmov 2475754826   ;;  %v321_v26 = vmov 2131351028   ;;  %v322_v28 = vmov 2102212464  }
  0x12   :  { %v323_v30 = vmov 920167782   ;;  %v324_v37 = vmov 1326507024  }
  0x15   :  { %v35_v4 = vstv %s24_s14  ;;  %v38_v5 = vstv %s272_s15 }
  0x16   :  { %v36_v6 = vmul.f32 %v349_v2, %v35_v4  ;;  %v39_v7 = vmul.f32 %v276_v1, %v38_v5 }
  0x18   :  { %v37_v8 = vadd.f32 %v274_v3, %v36_v6 }
  0x1a   :  { %v40_v9 = vadd.f32 %v39_v7, %v37_v8 }
  0x1c   :  { %v355_v10 = vmul.f32 0.05, %v40_v9  ;;  %286 = vst [vmem:[%s394_s2 + $0x2] sm:$0x1] %v40_v9 }
  0x1e   :  { %v50_v11 = vand.u32 2139095040, %v355_v10  ;;  %v47_v13 = vand.u32 2147483647, %v355_v10  ;;  %vm49_vm7 = vcmp.lt.s32.totalorder %v355_v10, 0  ;;  %vm139_vm15 = vweird.f32 %v355_v10 }
  0x20   :  { %v51_v12 = vshrl.u32 %v50_v11, 23  ;;  %v54_v16 = vand.u32 8388607, %v47_v13  ;;  %vm48_vm8 = vcmp.le.f32.partialorder %v47_v13, 0.7853982 }
  0x22   :  { %v277_v14 = vadd.s32 4294967169, %v51_v12  ;;  %v55_v19 = vor.u32 8388608, %v54_v16 }
  0x24   :  { %v57_v15 = vadd.s32 1, %v277_v14  ;;  %v95_v39 = vshll.u32 %v55_v19, 8 }
  0x26   :  { %vm58_vm0 = vcmp.gt.s32.totalorder %v57_v15, 0 }
  0x27   :  { %v59_v17 = vsel %vm58_vm0, %v57_v15, 0 }
  0x28   :  { %v61_v18 = vand.u32 31, %v59_v17  ;;  %v60_v20 = vshrl.u32 %v59_v17, 5 }
  0x2a   :  { %v62_v21 = vsub.s32 32, %v61_v18  ;;  %v64_v23 = vshll.u32 %v319_v22, %v61_v18  ;;  %v67_v25 = vshll.u32 %v320_v24, %v61_v18  ;;  %v70_v27 = vshll.u32 %v321_v26, %v61_v18 }
  0x2b   :  { %v73_v29 = vshll.u32 %v322_v28, %v61_v18  ;;  %v76_v31 = vshll.u32 %v323_v30, %v61_v18  ;;  %vm79_vm1 = vcmp.lt.s32.totalorder %v60_v20, 1  ;;  %vm82_vm2 = vcmp.lt.s32.totalorder %v60_v20, 4 }
  0x2c   :  { %v63_v32 = vshrl.u32 %v319_v22, %v62_v21  ;;  %v65_v33 = vshrl.u32 %v320_v24, %v62_v21  ;;  %v68_v34 = vshrl.u32 %v321_v26, %v62_v21  ;;  %v71_v35 = vshrl.u32 %v322_v28, %v62_v21 }
  0x2d   :  { %v74_v36 = vshrl.u32 %v323_v30, %v62_v21  ;;  %v77_v38 = vshrl.u32 %v324_v37, %v62_v21  ;;  %vm80_vm3 = vcmp.lt.s32.totalorder %v60_v20, 2  ;;  %vm81_vm4 = vcmp.lt.s32.totalorder %v60_v20, 3 }
  0x2e   :  { %v66_v40 = vor.u32 %v65_v33, %v64_v23  ;;  %v69_v41 = vor.u32 %v68_v34, %v67_v25  ;;  %v72_v42 = vor.u32 %v71_v35, %v70_v27  ;;  %v26_v23 = vld [vmem:[%s393_s1] sm:$0x1]  ;;  %v43_v28 = vmul.f32 %v349_v2, %v349_v2 }
  0x2f   :  { %v75_v43 = vor.u32 %v74_v36, %v73_v29  ;;  %v78_v44 = vor.u32 %v77_v38, %v76_v31  ;;  %v42_v27 = vmul.f32 %v26_v23, %v26_v23 }
  0x30   :  { %v83_v45 = vsel %vm79_vm1, %v63_v32, %v66_v40  ;;  %v84_v46 = vsel %vm82_vm2, %v72_v42, 2102212464  ;;  %v87_v47 = vsel %vm79_vm1, %v66_v40, %v69_v41  ;;  %v91_v48 = vsel %vm79_vm1, %v69_v41, %v72_v42 }
  0x31   :  { %v85_v49 = vsel %vm81_vm4, %v69_v41, %v84_v46  ;;  %v88_v50 = vsel %vm82_vm2, %v75_v43, 920167782  ;;  %v92_v51 = vsel %vm82_vm2, %v78_v44, 1326507024  ;;  %v44_v34 = vadd.f32 %v43_v28, %v42_v27 }
  0x32   :  { %v89_v52 = vsel %vm81_vm4, %v72_v42, %v88_v50  ;;  %v93_v53 = vsel %vm81_vm4, %v75_v43, %v92_v51  ;;  %v86_v54 = vsel %vm80_vm3, %v83_v45, %v85_v49 }
  0x33   :  { %v90_v55 = vsel %vm80_vm3, %v87_v47, %v89_v52  ;;  %v94_v56 = vsel %vm80_vm3, %v91_v48, %v93_v53  ;;  %v102_v61 = vmul.u32 %v95_v39, %v86_v54  ;;  %v45_v36 = vmax.f32 %v44_v34, 1e-12 }
  0x34   :  { %v364_v57 = vmul.u32.u64.low %v95_v39, %v94_v56  ;;  %v365_v58 = vmul.u32.u64.high %v95_v39, %v94_v56, %v364_v57  ;;  %v367_v59 = vmul.u32.u64.low %v95_v39, %v90_v55  ;;  %v368_v60 = vmul.u32.u64.high %v95_v39, %v90_v55, %v367_v59 }
  0x36   :  { %vm104_vm5 = vc.u32 %v365_v58, %v367_v59  ;;  %v105_v62 = vadd.s32 1, %v368_v60  ;;  %v103_v11 = vadd.s32 %v367_v59, %v365_v58 }
  0x38   :  { %v106_v63 = vsel %vm104_vm5, %v105_v62, %v368_v60 }
  0x39   :  { %v107_v0 = vadd.s32 %v106_v63, %v102_v61 }
  0x3b   :  { %v108_v1 = vadd.s32 536870912, %v107_v0 }
  0x3d   :  { %v109_v3 = vshrl.u32 %v108_v1, 30 }
  0x3f   :  { %v110_v4 = vshll.u32 %v109_v3, 30  ;;  %v133_v25 = vsub.s32 4, %v109_v3 }
  0x41   :  { %v111_v5 = vsub.s32 %v107_v0, %v110_v4  ;;  %v134_v30 = vsel %vm49_vm7, %v133_v25, %v109_v3 }
  0x42   :  { %v136_v33 = vsel %vm48_vm8, 0, %v134_v30 }
  0x43   :  { %v113_v6 = vsub.s32 0, %v111_v5  ;;  %v243_v35 = vadd.s32 3, %v136_v33  ;;  %v140_v37 = vand.u32 3, %v136_v33 }
  0x45   :  { %v278_v7 = vmin.u32 %v113_v6, %v111_v5  ;;  %v244_v38 = vand.u32 3, %v243_v35  ;;  %vm145_vm9 = vcmp.eq.s32.totalorder %v140_v37, 2  ;;  %vm142_vm11 = vcmp.eq.s32.totalorder %v140_v37, 0 }
  0x46   :  { %vm141_vm13 = vcmp.lt.s32.totalorder %v140_v37, 2 }
  0x47   :  { %v115_v8 = vclz %v278_v7  ;;  %vm249_vm10 = vcmp.eq.s32.totalorder %v244_v38, 2  ;;  %vm246_vm12 = vcmp.eq.s32.totalorder %v244_v38, 0  ;;  %vm245_vm14 = vcmp.lt.s32.totalorder %v244_v38, 2 }
  0x49   :  { %v279_v9 = vadd.s32 4294967294, %v115_v8 }
  0x4b   :  { %vm280_vm6 = vcmp.lt.s32.totalorder %v279_v9, 0 }
  0x4c   :  { %v118_v12 = vsel %vm280_vm6, 0, %v279_v9 }
  0x4d   :  { %v119_v14 = vsub.s32 32, %v118_v12  ;;  %v120_v15 = vshll.u32 %v111_v5, %v118_v12  ;;  %v123_v16 = vsub.s32 4294967266, %v118_v12 }
  0x4f   :  { %v121_v17 = vshrl.u32 %v103_v11, %v119_v14  ;;  %v124_v18 = vadd.s32 127, %v123_v16 }
  0x51   :  { %v122_v19 = vor.u32 %v121_v17, %v120_v15  ;;  %v125_v20 = vshll.u32 %v124_v18, 23 }
  0x53   :  { %v126_v21 = vor.u32 4788187, %v125_v20  ;;  %v129_v22 = vcvt.s32.f32 %v122_v19 }
  0x55   :  { %v127_v24 = vand.u32 2147483647, %v126_v21 }
  0x57   :  { %v130_v26 = vmul.f32 %v129_v22, %v127_v24 }
  0x59   :  { %v131_v29 = vxor.u32 2147483648, %v130_v26 }
  0x5b   :  { %v132_v31 = vsel %vm49_vm7, %v131_v29, %v130_v26 }
  0x5c   :  { %v135_v32 = vsel %vm48_vm8, %v355_v10, %v132_v31 }
  0x5d   :  { %298 = vcosq.f32 %v135_v32 }
  0x5e   :  { %300 = vsinq.f32 %v135_v32 }
  0x5f   :  { %302 = vrsqrt.f32 %v45_v36 }
  0x67   :  { %v299_v39 = vpop.eup %298 }
  0x68   :  { %v301_v40 = vpop.eup %300  ;;  %v146_v13 = vxor.u32 2147483648, %v299_v39 }
  0x69   :  { %v143_v41 = vxor.u32 2147483648, %v301_v40  ;;  %v303_v54 = vpop.eup %302 }
  0x6a   :  { %v147_v42 = vsel %vm145_vm9, %v146_v13, %v301_v40  ;;  %v251_v43 = vsel %vm249_vm10, %v146_v13, %v301_v40 }
  0x6b   :  { %v144_v44 = vsel %vm142_vm11, %v299_v39, %v143_v41  ;;  %v248_v45 = vsel %vm246_vm12, %v299_v39, %v143_v41 }
  0x6c   :  { %v148_v46 = vsel %vm141_vm13, %v144_v44, %v147_v42  ;;  %v252_v47 = vsel %vm245_vm14, %v248_v45, %v251_v43 }
  0x6d   :  { %v149_v48 = vsel %vm139_vm15, nan, %v148_v46  ;;  %v253_v49 = vsel %vm139_vm15, nan, %v252_v47 }
  0x6e   :  { %v254_v50 = vmul.f32 %v149_v48, %v26_v23  ;;  %v255_v51 = vmul.f32 %v349_v2, %v253_v49  ;;  %v259_v52 = vmul.f32 %v349_v2, %v149_v48  ;;  %v260_v53 = vmul.f32 %v253_v49, %v26_v23 }
  0x70   :  { %v256_v55 = vsub.f32 %v254_v50, %v255_v51  ;;  %v261_v56 = vadd.f32 %v260_v53, %v259_v52 }
  0x72   :  { %v257_v57 = vmul.f32 %v303_v54, %v256_v55  ;;  %v262_v58 = vmul.f32 %v303_v54, %v261_v56 }
  0x74   :  { %258 = vst [vmem:[%s394_s2] sm:$0x1] %v257_v57  ;;  %285 = vst [vmem:[%s394_s2 + $0x1] sm:$0x1] %v262_v58 }
  0x75   :  { %271 = vsyncpa [#allocation3], 1 }

</bundles_post_ra>
